<compile_context>
chip_gen: v6e
topology: v6e:2x2x1
jax: 0.10.0
libtpu: 0.0.40
codegen_flags: <defaults>
</compile_context>

<pallas_src>
import functools
import math

import jax
import jax.numpy as jnp
from jax.experimental import pallas as pl
from jax.experimental.pallas import tpu as pltpu


_CHUNK_ROWS = 256  # in-kernel row chunk (bounds f32 temporaries, mult. of 8/16/32)


# ----------------------------- Pallas kernel --------------------------------

def _layernorm_kernel(x_ref, g_ref, b_ref, o_ref, *, eps, chunk_rows, n_chunks):
    # x_ref / o_ref: (block_rows, D) tile of the flattened (rows, D) tensor.
    # gamma/beta are loaded (and broadcast) once, outside the chunk loop.
    g = g_ref[...]          # (1, D) f32
    b = b_ref[...]          # (1, D) f32

    def body(c, carry):
        r0 = pl.multiple_of(c * chunk_rows, chunk_rows)
        x = x_ref[pl.ds(r0, chunk_rows), :].astype(jnp.float32)
        mean = jnp.mean(x, axis=-1, keepdims=True)
        centered = x - mean
        var = jnp.mean(centered * centered, axis=-1, keepdims=True)  # biased, like torch
        inv = jax.lax.rsqrt(var + eps)
        y = centered * inv * g + b
        o_ref[pl.ds(r0, chunk_rows), :] = y.astype(o_ref.dtype)
        return carry

    # Short, fixed trip count -> unroll for LLO scheduler visibility.
    jax.lax.fori_loop(0, n_chunks, body, None, unroll=(n_chunks <= 8))


# ----------------------------- tiling policy ---------------------------------

def _cdiv(a, b):
    return -(-a // b)


def _round_up(a, m):
    return _cdiv(a, m) * m


def _choose_block_rows(rows, D, dtype, *, tile_budget_bytes, chunk_rows):
    """Row-tile size: as big as the bandwidth plateau allows, but never a
    single-step grid (we want DMA/compute overlap and megacore sharding)."""
    itemsize = jnp.dtype(dtype).itemsize
    # Sublane packing multiple: f32 -> 8, bf16 -> 16, int8/fp8 -> 32.
    sub = 8 * max(1, 4 // itemsize)
    bytes_per_row = max(1, D * itemsize)
    rows_padded = _round_up(rows, sub)

    # Upper bound from the per-tile I/O budget (bandwidth plateau).
    block_rows = max(sub, (tile_budget_bytes // bytes_per_row) // sub * sub)
    block_rows = min(block_rows, rows_padded)

    # Grid-step floor: at least 2 steps when the problem spans >= 2 sublane
    # groups; prefer ~8 steps as long as each tile stays >= ~1 MiB.
    if rows_padded >= 2 * sub:
        block_rows = min(block_rows, _round_up(_cdiv(rows, 2), sub))
    cand8 = max(sub, _round_up(_cdiv(rows, 8), sub))
    if cand8 * bytes_per_row >= (1 << 20):
        block_rows = min(block_rows, cand8)

    # Keep block_rows a multiple of the in-kernel chunk so the pl.ds slices
    # never run past the VMEM tile (no runtime OOB check on VMEM refs).
    if block_rows > chunk_rows:
        block_rows = (block_rows // chunk_rows) * chunk_rows
    return int(max(sub, block_rows))


# ------------------------------- wrapper -------------------------------------

def layernorm_pallas(x, gamma, beta, *, eps=1e-5, block_rows=None):
    """LayerNorm over the last axis of x (any leading shape)."""
    orig_shape = x.shape
    D = orig_shape[-1]
    rows = math.prod(orig_shape[:-1]) if len(orig_shape) > 1 else 1

    # Lane-density guard: D < 128 would run at D/128 lane utilization with
    # masked partial stores -- XLA does at least as well, so skip the kernel.
    if D < 128 or rows == 0:
        x32 = x.astype(jnp.float32)
        mean = jnp.mean(x32, axis=-1, keepdims=True)
        var = jnp.mean((x32 - mean) ** 2, axis=-1, keepdims=True)
        y = (x32 - mean) * jax.lax.rsqrt(var + eps)
        y = y * gamma.astype(jnp.float32) + beta.astype(jnp.float32)
        return y.astype(x.dtype)

    x2 = x.reshape(rows, D)

    # Generation-aware VMEM budgeting.
    try:
        vmem_capacity = int(pltpu.get_tpu_info().vmem_capacity_bytes)
    except Exception:
        vmem_capacity = 64 << 20  # conservative default (v7x per-TC)
    small_vmem = vmem_capacity <= (64 << 20)          # v7x per TC
    tile_budget = (4 << 20) if small_vmem else (8 << 20)

    if block_rows is None:
        block_rows = _choose_block_rows(
            rows, D, x.dtype, tile_budget_bytes=tile_budget,
            chunk_rows=_CHUNK_ROWS)

    chunk_rows = min(block_rows, _CHUNK_ROWS)
    assert block_rows % chunk_rows == 0
    n_chunks = block_rows // chunk_rows

    g2 = gamma.reshape(1, D).astype(jnp.float32)
    b2 = beta.reshape(1, D).astype(jnp.float32)

    # Explicit scoped-VMEM budget: double-buffered in + out tiles plus the
    # chunk-sized f32 temporaries, clamped per generation (v7x: 64 MiB
    # physical per TC -> <=40 MiB; v5e/v6e: 128 MiB -> <=96 MiB).
    itemsize = jnp.dtype(x.dtype).itemsize
    tile_bytes = block_rows * D * itemsize
    chunk_f32 = chunk_rows * D * 4
    needed = 4 * tile_bytes + 6 * chunk_f32 + (2 << 20)
    cap = (40 << 20) if small_vmem else (96 << 20)
    vmem_limit = int(min(max(needed, 32 << 20), cap))

    grid = (pl.cdiv(rows, block_rows),)

    kernel = functools.partial(_layernorm_kernel, eps=eps,
                               chunk_rows=chunk_rows, n_chunks=n_chunks)
    out = pl.pallas_call(
        kernel,
        out_shape=jax.ShapeDtypeStruct((rows, D), x.dtype),
        grid_spec=pltpu.PrefetchScalarGridSpec(
            num_scalar_prefetch=0,
            grid=grid,
            in_specs=[
                pl.BlockSpec((block_rows, D), lambda i: (i, 0)),
                pl.BlockSpec((1, D), lambda i: (0, 0)),
                pl.BlockSpec((1, D), lambda i: (0, 0)),
            ],
            out_specs=pl.BlockSpec((block_rows, D), lambda i: (i, 0)),
        ),
        compiler_params=pltpu.CompilerParams(
            dimension_semantics=("parallel",),
            vmem_limit_bytes=vmem_limit),
    )(x2, g2, b2)

    return out.reshape(orig_shape)


# ------------------------------ PreNorm module ------------------------------

class PreNorm:
    """JAX/Pallas port of PreNorm: y = fn(LayerNorm(x), context=LayerNorm(ctx))."""

    def __init__(self, dim, fn, context_dim=None):
        self.fn = fn
        self.dim = dim
        self.context_dim = context_dim
        # nn.LayerNorm default init: weight = 1, bias = 0 (deterministic).
        self.gamma = jnp.ones((dim,), jnp.float32)
        self.beta = jnp.zeros((dim,), jnp.float32)
        if context_dim is not None:
            self.gamma_ctx = jnp.ones((context_dim,), jnp.float32)
            self.beta_ctx = jnp.zeros((context_dim,), jnp.float32)

    def __call__(self, x, **kwargs):
        x = layernorm_pallas(x, self.gamma, self.beta)
        if self.context_dim is not None:
            context = kwargs["context"]
            normed_context = layernorm_pallas(context, self.gamma_ctx, self.beta_ctx)
            kwargs = dict(kwargs, context=normed_context)
        return self.fn(x, **kwargs)


# --------------------------------- demo / test -------------------------------

def _reference_layernorm(x, gamma, beta, eps=1e-5):
    mean = jnp.mean(x, axis=-1, keepdims=True)
    var = jnp.mean((x - mean) ** 2, axis=-1, keepdims=True)
    return (x - mean) * jax.lax.rsqrt(var + eps) * gamma + beta


if __name__ == "__main__":
    key = jax.random.PRNGKey(0)
    # Lane-dense shapes so the Pallas path (D >= 128) is exercised end-to-end.
    B, N, D = 2, 8, 256        # x: (batch, seq, dim)
    M, D_CTX = 8, 128          # context: (batch, ctx_seq, context_dim)

    kx, kc, kw, kb = jax.random.split(key, 4)
    x = jax.random.normal(kx, (B, N, D), jnp.float32)
    context = jax.random.normal(kc, (B, M, D_CTX), jnp.float32)

    # The wrapped `fn` (arbitrary in the original module). Here: a simple
    # deterministic linear on x plus a pooled linear on the normed context,
    # kept in plain JAX (it is not part of PreNorm's own compute).
    Wx = jax.random.normal(kw, (D, D), jnp.float32) * 0.02
    Wc = jax.random.normal(kb, (D_CTX, D), jnp.float32) * 0.02

    def fn(x_normed, context=None):
        out = x_normed @ Wx
        if context is not None:
            out = out + jnp.mean(context @ Wc, axis=1, keepdims=True)
        return out

    prenorm = PreNorm(D, fn, context_dim=D_CTX)
    y = prenorm(x, context=context)
    jax.block_until_ready(y)

    # Correctness of the full PreNorm forward vs. a pure-JAX reference.
    y_ref = fn(_reference_layernorm(x, prenorm.gamma, prenorm.beta),
               context=_reference_layernorm(context, prenorm.gamma_ctx,
                                            prenorm.beta_ctx))
    assert y.shape == (B, N, D)
    assert jnp.allclose(y, y_ref, atol=1e-4, rtol=1e-4)

    # Direct LayerNorm check on the Pallas path.
    yl = layernorm_pallas(x, prenorm.gamma, prenorm.beta)
    yl_ref = _reference_layernorm(x, prenorm.gamma, prenorm.beta)
    assert jnp.allclose(yl, yl_ref, atol=2e-5, rtol=2e-5)

    # Multi-block ragged case: rows = 2*block_rows + r (r != 0) with k >= 2
    # full blocks, locking in the masked-store behavior on the last tile.
    xr = jax.random.normal(kx, (3, 100, D), jnp.float32)   # rows = 300
    yr = layernorm_pallas(xr, prenorm.gamma, prenorm.beta, block_rows=128)
    jax.block_until_ready(yr)
    yr_ref = _reference_layernorm(xr, prenorm.gamma, prenorm.beta)
    assert jnp.allclose(yr, yr_ref, atol=2e-5, rtol=2e-5)

    # Small-D path (lane-density guard -> plain-JAX fallback), as in the
    # original module's tiny context dims.
    xs = jax.random.normal(kc, (2, 8, 32), jnp.float32)
    gs = jnp.ones((32,), jnp.float32)
    bs = jnp.zeros((32,), jnp.float32)
    ys = layernorm_pallas(xs, gs, bs)
    assert jnp.allclose(ys, _reference_layernorm(xs, gs, bs),
                        atol=2e-5, rtol=2e-5)

    print("KERNEL_OK")
</pallas_src>

<mosaic_0001>
module attributes {stable_mosaic.version = 11 : i64} {
  func.func @_layernorm_kernel(%arg0: i32, %arg1: memref<8x256xf32, #tpu.memory_space<vmem>>, %arg2: memref<1x256xf32, #tpu.memory_space<vmem>>, %arg3: memref<1x256xf32, #tpu.memory_space<vmem>>, %arg4: memref<8x256xf32, #tpu.memory_space<vmem>>) attributes {dimension_semantics = [#tpu.dimension_semantics<parallel>], iteration_bounds = array<i64: 2>, scalar_prefetch = 0 : i64, scratch_operands = 0 : i64, tpu.core_type = #tpu.core_type<tc>, window_params = [{transform_indices = @transform_0, window_bounds = array<i64: 8, 256>}, {pipeline_mode = #tpu.pipeline_mode<synchronous>, transform_indices = @transform_1, window_bounds = array<i64: 1, 256>}, {pipeline_mode = #tpu.pipeline_mode<synchronous>, transform_indices = @transform_2, window_bounds = array<i64: 1, 256>}, {transform_indices = @transform_3, window_bounds = array<i64: 8, 256>}]} {
    %c0 = arith.constant 0 : index
    %c0_0 = arith.constant 0 : index
    %0 = vector.load %arg2[%c0, %c0_0] : memref<1x256xf32, #tpu.memory_space<vmem>>, vector<1x256xf32>
    %c0_1 = arith.constant 0 : index
    %c0_2 = arith.constant 0 : index
    %1 = vector.load %arg3[%c0_1, %c0_2] : memref<1x256xf32, #tpu.memory_space<vmem>>, vector<1x256xf32>
    %c0_i32 = arith.constant 0 : i32
    %c8_i32 = arith.constant 8 : i32
    %2 = arith.muli %c0_i32, %c8_i32 : i32
    %3 = tpu.assume_multiple %2, 8 : i32
    %4 = arith.index_cast %3 : i32 to index
    %c0_3 = arith.constant 0 : index
    %5 = vector.load %arg1[%4, %c0_3] : memref<8x256xf32, #tpu.memory_space<vmem>>, vector<8x256xf32>
    %cst = arith.constant dense<0.000000e+00> : vector<8xf32>
    %6 = vector.multi_reduction <add>, %5, %cst [1] : vector<8x256xf32> to vector<8xf32>
    %7 = vector.shape_cast %6 : vector<8xf32> to vector<8x1xf32>
    %cst_4 = arith.constant 2.560000e+02 : f32
    %8 = vector.broadcast %cst_4 : f32 to vector<8x1xf32>
    %9 = arith.divf %7, %8 : vector<8x1xf32>
    %10 = vector.broadcast %9 : vector<8x1xf32> to vector<8x256xf32>
    %11 = arith.subf %5, %10 : vector<8x256xf32>
    %12 = arith.mulf %11, %11 : vector<8x256xf32>
    %cst_5 = arith.constant dense<0.000000e+00> : vector<8xf32>
    %13 = vector.multi_reduction <add>, %12, %cst_5 [1] : vector<8x256xf32> to vector<8xf32>
    %14 = vector.shape_cast %13 : vector<8xf32> to vector<8x1xf32>
    %cst_6 = arith.constant 2.560000e+02 : f32
    %15 = vector.broadcast %cst_6 : f32 to vector<8x1xf32>
    %16 = arith.divf %14, %15 : vector<8x1xf32>
    %cst_7 = arith.constant 9.99999974E-6 : f32
    %17 = vector.broadcast %cst_7 : f32 to vector<8x1xf32>
    %18 = arith.addf %16, %17 : vector<8x1xf32>
    %19 = math.rsqrt %18 : vector<8x1xf32>
    %20 = vector.broadcast %19 : vector<8x1xf32> to vector<8x256xf32>
    %21 = arith.mulf %11, %20 : vector<8x256xf32>
    %22 = vector.broadcast %0 : vector<1x256xf32> to vector<8x256xf32>
    %23 = arith.mulf %21, %22 : vector<8x256xf32>
    %24 = vector.broadcast %1 : vector<1x256xf32> to vector<8x256xf32>
    %25 = arith.addf %23, %24 : vector<8x256xf32>
    %26 = arith.index_cast %3 : i32 to index
    %c0_8 = arith.constant 0 : index
    %27 = vector.load %arg4[%26, %c0_8] : memref<8x256xf32, #tpu.memory_space<vmem>>, vector<8x256xf32>
    tpu.vector_store %arg4[%26, %c0_8], %25 {strides = array<i32>} : memref<8x256xf32, #tpu.memory_space<vmem>>, vector<8x256xf32>,
    %c1_i32 = arith.constant 1 : i32
    return
  }
  func.func @transform_0(%arg0: i32) -> (i32, i32) {
    %c0_i32 = arith.constant 0 : i32
    %c0_i32_0 = arith.constant 0 : i32
    return %arg0, %c0_i32 : i32, i32
  }
  func.func @transform_1(%arg0: i32) -> (i32, i32) {
    %c0_i32 = arith.constant 0 : i32
    %c0_i32_0 = arith.constant 0 : i32
    %c0_i32_1 = arith.constant 0 : i32
    return %c0_i32, %c0_i32_0 : i32, i32
  }
  func.func @transform_2(%arg0: i32) -> (i32, i32) {
    %c0_i32 = arith.constant 0 : i32
    %c0_i32_0 = arith.constant 0 : i32
    %c0_i32_1 = arith.constant 0 : i32
    return %c0_i32, %c0_i32_0 : i32, i32
  }
  func.func @transform_3(%arg0: i32) -> (i32, i32) {
    %c0_i32 = arith.constant 0 : i32
    %c0_i32_0 = arith.constant 0 : i32
    return %arg0, %c0_i32 : i32, i32
  }
}

</mosaic_0001>

<bundles_post_ra>
// kernel: tpu_custom_call.1
= control target key start
LH: loop header
LB: loop body
LE: loop exit
PB: predicated region body
PF: predicated region fallthrough
CT: control target
= control target key end

     0   :  { %8 = vsyncpa [#allocation3], 0  ;;  %s752_s0 = inlined_call_operand.hbm [shape: f32[16,256], index: 0, kind: input, shape index: {}]   ;;  %s753_s1 = inlined_call_operand.hbm [shape: f32[1,256], index: 1, kind: input, shape index: {}]   ;;  %s754_s2 = inlined_call_operand.vmem [shape: f32[1,256], index: 2, kind: input, shape index: {}]   ;;  %s755_s3 = inlined_call_operand.hbm [shape: f32[16,256], index: 3, kind: output, shape index: {}]  }
   0x1   :  { %10 = vsyncpa [#allocation3 + $0x1], 0 }
   0x2   :  { %11 = vsyncpa [#allocation6], 0 }
   0x3   :  { %12 = vsyncpa [#allocation4], 0 }
   0x4   :  { %14 = vsyncpa [#allocation4 + $0x1], 0  ;;  %s573_s12 = smov 0   ;;  %s575_s13 = smov 0  }
   0x5   :  { %s577_s14 = smov 0   ;;  %s579_s15 = smov 0  }
   0x6 LB: > { %s594_s16 = sadd.s32 4294967295, %s548_s15   ;;  %s349_s17 = sadd.s32 4294967294, %s548_s15   ;;  %s548_s15 = sphi %s579_s15, %s778_s15   ;;  %s544_s14 = sphi %s577_s14, %s777_s14   ;;  %s540_s13 = sphi %s575_s13, %s776_s13   ;;  %s536_s12 = sphi %s573_s12, %s775_s12  }
   0x7   : > { %p40_p0 = scmp.ne.s32.totalorder %s540_s13, %s536_s12  ;;  %p756_p1 = scmp.eq.s32.totalorder %s594_s16, 0 }
   0x8   : > { %p112_p3 = scmp.eq.s32.totalorder %s349_s17, 1  ;;  %p350_p5 = scmp.ge.s32.totalorder %s548_s15, 1 }
   0x9   : > { %p603_p4 = por %p756_p1, %p40_p0  ;;  %p119_p7 = scmp.lt.s32.totalorder %s548_s15, 3 }
   0xa   : > { %p608_p6 = por %p112_p3, %p40_p0  ;;  %s550_s21 = smov [#allocation5]  }
   0xb   : > { %s760_s18 = scalar_select %p603_p4, 1, 0 }
   0xc   : > { %s761_s19 = scalar_select %p608_p6, 1, 0 }
   0xd   : > { %p613_p8 = pnand %p350_p5, %p119_p7  ;;  %s132_s22 = sshll.u32 %s550_s21, 4  ;;  %s133_s22 = int_to_ptr.vmem [resolvable:$true] %s132_s22 }
   0xe   : > { %s621_s23 = sadd.s32 1, %s548_s15   ;;  %s27_s27 = sadd.s32 1, %s544_s14 }
   0xf   : > { %s762_s20 = scalar_select %p613_p8, 1, 0 }
  0x10   : > { %p375_p10 = pneg %p613_p8  ;;  %s24_s25 = ssub.s32 %s548_s15, %s621_s23 }
  0x11   : > { %p631_p12 = scmp.eq.s32.totalorder %s24_s25, 0  ;;  %p34_p13 = scmp.ne.s32.totalorder %s544_s14, %s540_s13 }
  0x12   : > { %p625_p11 = pnand %p375_p10, %p756_p1  ;;  %s437_s28 = scalar_lea.vmem %s133_s22, 32 }
  0x13   : > { %p438_p3 = scmp.ne.s32.totalorder %s133_s22, %s437_s28  ;;  %p445_p9 = scmp.lt.s32.totalorder %s133_s22, %s133_s22 }
  0x14   : > { %p428_p0 = pneg %p625_p11  ;;  %p446_p2 = scmp.lt.s32.totalorder %s437_s28, %s437_s28 }
  0x16   : > { %p440_p5 = pnand %p438_p3, %p428_p0  ;;  %p447_p10 = por %p446_p2, %p445_p9 }
  0x18   : > { %p441_p7 = pneg %p440_p5 }
  0x1a   : > { %p448_p1 = pnand %p447_p10, %p441_p7 }
  0x1c   : > { %451 = shalt.err (!%p448_p1)
}
  0x1d   : > { %378 = dma.hbm_to_vmem [thread:$0]  (!%p625_p11), %s753_s1, 32, %s133_s22, [#allocation6]  }
  0x1e   : > { %s648_s4 = scalar_select %p631_p12, %s544_s14, %s27_s27  }
  0x1f   : > { %p35_p1 = scmp.eq.s32.totalorder %s548_s15, 0  ;;  %p765_p2 = scmp.eq.s32.totalorder %s594_s16, 1 }
  0x20   : > { %p388_p0 = scmp.lt.s32.totalorder %s548_s15, 2  ;;  %s146_s6 = sand.u32 1, %s544_s14  }
  0x21   : > { %p656_p9 = por %p765_p2, %p34_p13  ;;  %p36_p3 = por %p35_p1, %p34_p13 }
  0x22   : > { %s353_s7 = sshll.u32 %s146_s6, 4  ;;  %s365_s8 = sshll.u32 %s548_s15, 8 }
  0x23   : > { %s766_s5 = scalar_select %p656_p9, 1, 0 }
  0x24   : > { %s669_s11 = scalar_lea.hbm %s752_s0, %s365_s8  ;;  %s150_s17 = scalar_lea.vmem [#allocation2], %s353_s7 }
  0x25   : > { %s158_s21 = sshll.u32 %s150_s17, 4  ;;  %p671_p11 = pnand %p388_p0, %p36_p3  ;;  %s159_s21 = int_to_ptr.vmem [resolvable:$true] %s158_s21 }
  0x26   : > { %s147_s24 = scalar_lea.sflag [#allocation3], %s146_s6  ;;  %s452_s25 = scalar_lea.hbm %s669_s11, 256 }
  0x27   : > { %p453_p12 = scmp.ne.s32.totalorder %s669_s11, %s452_s25  ;;  %p454_p13 = pneg %p671_p11 }
  0x28   : > { %s457_s28 = scalar_lea.hbm %s752_s0, 512  ;;  %p458_p10 = scmp.lt.s32.totalorder %s669_s11, %s752_s0 }
  0x29   : > { %p455_p5 = pnand %p454_p13, %p453_p12  ;;  %p459_p1 = scmp.lt.s32.totalorder %s457_s28, %s452_s25 }
  0x2b   : > { %p456_p7 = pneg %p455_p5  ;;  %p460_p2 = por %p459_p1, %p458_p10 }
  0x2d   : > { %p461_p0 = pnand %p460_p2, %p456_p7 }
  0x2f   : > { %464 = shalt.err (!%p461_p0)
}
  0x30   : > { %s465_s7 = scalar_lea.vmem %s159_s21, 256  ;;  %s551_s6 = smov [#allocation2]  }
  0x31   : > { %p466_p3 = scmp.ne.s32.totalorder %s159_s21, %s465_s7  ;;  %s470_s8 = sshll.u32 %s551_s6, 4  ;;  %s471_s8 = int_to_ptr.vmem [resolvable:$false] %s470_s8 }
  0x32   : > { %s472_s9 = scalar_lea.vmem %s471_s8, 512  ;;  %p473_p12 = scmp.lt.s32.totalorder %s159_s21, %s471_s8 }
  0x33   : > { %p468_p6 = pnand %p466_p3, %p454_p13  ;;  %p474_p5 = scmp.lt.s32.totalorder %s472_s9, %s465_s7 }
  0x35   : > { %p469_p9 = pneg %p468_p6  ;;  %p475_p4 = por %p474_p5, %p473_p12 }
  0x37   : > { %p476_p8 = pnand %p475_p4, %p469_p9 }
  0x39   : > { %479 = shalt.err (!%p476_p8)
}
  0x3a   : > { %382 = dma.hbm_to_vmem [thread:$0]  (!%p671_p11), %s669_s11, 256, %s159_s21, %s147_s24  }
  0x3b   : > { %p768_p7 = scmp.ne.s32.totalorder %s762_s20, 0 }
  0x3c   : > { %s692_s10 = sand.u32 (!%p768_p7), 1, %s540_s13   ;;  %p769_p4 = scmp.ne.s32.totalorder (!%p768_p7), %s760_s18, 0 }
  0x3d   : > { %167 = sbr.rel (%p768_p7) target bundleno = 394 (0x18a), region = 32  ;;  %s357_s17 = sshll.u32 (!%p768_p7), %s692_s10, 4 }
  0x3e   : > { %s170_s25 = scalar_lea.sflag (!%p768_p7), [#allocation3], %s692_s10  ;;  %s173_s26 = scalar_lea.vmem (!%p768_p7), [#allocation2], %s357_s17 }
  0x42   : > { %523 = dma.done.wait (%p769_p4), %s170_s25, 256  }
  0x43   : > { %525 = vsyncadd (%p769_p4), %s170_s25, 4294967040  ;;  %p770_p6 = scmp.eq.s32.totalorder %s594_s16, 0 }
  0x45   : > { %527 = dma.done.wait (%p770_p6), [#allocation6], 32   ;;  %p771_p8 = pmov %p770_p6 }
  0x46   : > { %v205_v0 = vld [vmem:[%s173_s26] sm:$0xff]  ;;  %v206_v1 = vld [vmem:[%s173_s26 + $0x8] sm:$0xff]  ;;  %v225_v13 = vlaneseq  ;;  %s366_s11 = sshll.u32 %s594_s16, 8  ;;  %s199_s21 = scalar_lea.vmem [#allocation7], %s357_s17 }
  0x47   : > { %529 = vsyncadd (%p771_p8), [#allocation6], 4294967264  ;;  %v207_v2 = vadd.f32 %v206_v1, %v205_v0  ;;  %v200_v17 = vld [vmem:[#allocation5] sm:$0x3]  ;;  %s269_s22 = sshll.u32 %s199_s21, 4  ;;  %s715_s28 = scalar_lea.hbm %s755_s3, %s366_s11  ;;  %s270_s22 = int_to_ptr.vmem [resolvable:$true] %s269_s22 }
  0x48   : > { %v226_v14 = vshrl.u32 %v225_v13, 7  ;;  %v201_v18 = vld [vmem:[%s754_s2] sm:$0x3]  ;;  %s255_s29 = scalar_lea.sflag [#allocation4], %s692_s10  ;;  %s480_s30 = scalar_lea.vmem %s270_s22, 256 }
  0x49   : > { %208 = vadd.xlane.f32.xlu0 %v207_v2  ;;  %p481_p9 = scmp.ne.s32.totalorder %s270_s22, %s480_s30  ;;  %p772_p11 = scmp.ne.s32.totalorder %s766_s5, 0 }
  0x4a   : > { %v227_v15 = vsub.s32 0, %v226_v14  ;;  %v231_v16 = vsub.s32 1, %v226_v14  ;;  %s552_s16 = smov [#allocation7]  }
  0x4b   : > { %p482_p13 = pnand %p481_p9, %p772_p11  ;;  %s484_s7 = sshll.u32 %s552_s16, 4  ;;  %s485_s7 = int_to_ptr.vmem [resolvable:$false] %s484_s7 }
  0x4c   : > { %v228_v19 = vrot.slane %v200_v17, %v227_v15  ;;  %v232_v20 = vrot.slane %v200_v17, %v231_v16  ;;  %v241_v24 = vrot.slane %v201_v18, %v227_v15  ;;  %v245_v25 = vrot.slane %v201_v18, %v231_v16  ;;  %s486_s6 = scalar_lea.vmem %s485_s7, 512  ;;  %p487_p1 = scmp.lt.s32.totalorder %s270_s22, %s485_s7 }
  0x4d   : > { %p483_p10 = pneg %p482_p13  ;;  %p488_p2 = scmp.lt.s32.totalorder %s486_s6, %s480_s30 }
  0x4f   : > { %p489_p0 = por %p488_p2, %p487_p1 }
  0x51   : > { %p490_p3 = pnand %p489_p0, %p483_p10 }
  0xd2   : > { %v209_v3 = vpop.xlane.xlu0 %208 }
  0xd3   : > { %v211_v4 = vmul.f32 0.00390625, %v209_v3 }
  0xd5   : > { %v212_v5 = vsub.f32 %v205_v0, %v211_v4  ;;  %v213_v6 = vsub.f32 %v206_v1, %v211_v4 }
  0xd7   : > { %v214_v7 = vmul.f32 %v212_v5, %v212_v5  ;;  %v215_v8 = vmul.f32 %v213_v6, %v213_v6 }
  0xd9   : > { %v216_v9 = vadd.f32 %v215_v8, %v214_v7 }
  0xdb   : > { %217 = vadd.xlane.f32.xlu0 %v216_v9 }
 0x164   : > { %v218_v10 = vpop.xlane.xlu0 %217 }
 0x165   : > { %v219_v11 = vmul.f32 0.00390625, %v218_v10 }
 0x167   : > { %v220_v12 = vadd.f32 1e-05, %v219_v11 }
 0x169   : > { %424 = vrsqrt.f32 %v220_v12 }
 0x176   : > { %v425_v21 = vpop.eup %424 }
 0x177   : > { %v222_v22 = vmul.f32 %v425_v21, %v212_v5  ;;  %v223_v23 = vmul.f32 %v425_v21, %v213_v6 }
 0x179   : > { %v235_v26 = vmul.f32 %v228_v19, %v222_v22  ;;  %v236_v27 = vmul.f32 %v232_v20, %v223_v23 }
 0x17b   : > { %v248_v28 = vadd.f32 %v241_v24, %v235_v26  ;;  %v249_v29 = vadd.f32 %v245_v25, %v236_v27 }
 0x17d   : > { %252 = vst [vmem:[%s199_s21] sm:$0xff] %v248_v28  ;;  %253 = vst [vmem:[%s199_s21 + $0x8] sm:$0xff] %v249_v29 }
 0x17e   : > { %493 = shalt.err (!%p490_p3)
}
 0x17f   : > { %s494_s8 = scalar_lea.hbm %s715_s28, 256  ;;  %s498_s17 = scalar_lea.hbm %s755_s3, 512 }
 0x180   : > { %p495_p12 = scmp.ne.s32.totalorder %s715_s28, %s494_s8  ;;  %p499_p4 = scmp.lt.s32.totalorder %s715_s28, %s755_s3 }
 0x181   : > { %p500_p6 = scmp.lt.s32.totalorder %s498_s17, %s494_s8 }
 0x182   : > { %p496_p5 = pnand %p495_p12, %p772_p11 }
 0x183   : > { %p501_p8 = por %p500_p6, %p499_p4 }
 0x184   : > { %p497_p7 = pneg %p496_p5 }
 0x186   : > { %p502_p9 = pnand %p501_p8, %p497_p7 }
 0x188   : > { %505 = shalt.err (!%p502_p9)
}
 0x189   : > { %373 = dma.vmem_to_hbm [thread:$0]  (%p772_p11), %s270_s22, 256, %s715_s28, %s255_s29  }
 0x18a PF: > { %s281_s18 = sand.u32 1, %s536_s12   ;;  %p773_p13 = scmp.ne.s32.totalorder %s761_s19, 0 }
 0x18b   : > { %p774_p10 = scmp.ge.s32.totalorder %s548_s15, 2  ;;  %s282_s20 = scalar_lea.sflag [#allocation4], %s281_s18 }
 0x18d   : > { %p384_p1 = pnand %p774_p10, %p773_p13 }
 0x18f   : > { %p385_p2 = pneg %p384_p1 }
 0x191   : > { %531 = dma.done.wait (%p385_p2), %s282_s20, 256  }
 0x192   : > { %533 = vsyncadd (%p385_p2), %s282_s20, 4294967040  ;;  %p17_p0 = scmp.ge.s32.totalorder %s621_s23, 4   ;;  %s775_s12 = smov %s540_s13 }
 0x193   : > { %s776_s13 = smov %s544_s14  ;;  %s777_s14 = smov %s648_s4 }
 0x194   : > { %s778_s15 = smov %s621_s23  ;;  %19 = sbr.rel (!%p17_p0) target bundleno = 6 (0x6), region = 83 }
 0x199   :  { %287 = vsyncpa [#allocation3], 1 }
 0x19a   :  { %289 = vsyncpa [#allocation3 + $0x1], 1 }
 0x19b   :  { %290 = vsyncpa [#allocation6], 1 }
 0x19c   :  { %291 = vsyncpa [#allocation4], 1 }
 0x19d   :  { %293 = vsyncpa [#allocation4 + $0x1], 1 }

</bundles_post_ra>
